<compile_context>
chip_gen: v7x
topology: tpu7x:2x2x1
jax: 0.10.0
libtpu: 0.0.40
codegen_flags: <defaults>
</compile_context>

<pallas_src>
import functools

import jax
import jax.numpy as jnp
import numpy as np
from jax.experimental import pallas as pl
from jax.experimental.pallas import tpu as pltpu


# ----------------------------------------------------------------------------
# Pallas kernels
# ----------------------------------------------------------------------------
def _matmul_kernel(x_ref, w_ref, o_ref):
    # fused 1x1-conv hot path: plain MXU matmul on a row tile.
    o_ref[...] = jnp.dot(
        x_ref[...], w_ref[...], preferred_element_type=jnp.float32
    ).astype(o_ref.dtype)


def pointwise_conv(x2d, w, tm=256):
    """1x1 conv (no bias) == (M, Cin) @ (Cin, Cout), row-tiled (rows padded to tm)."""
    M, Cin = x2d.shape
    Cout = w.shape[1]
    Mp = ((M + tm - 1) // tm) * tm
    xp = jnp.pad(x2d, ((0, Mp - M), (0, 0))) if Mp != M else x2d
    out = pl.pallas_call(
        _matmul_kernel,
        out_shape=jax.ShapeDtypeStruct((Mp, Cout), x2d.dtype),
        grid=(Mp // tm,),
        in_specs=[
            pl.BlockSpec((tm, Cin), lambda i: (i, 0)),
            pl.BlockSpec((Cin, Cout), lambda i: (0, 0)),
        ],
        out_specs=pl.BlockSpec((tm, Cout), lambda i: (i, 0)),
        compiler_params=pltpu.CompilerParams(dimension_semantics=("parallel",)),
    )(xp, w)
    return out[:M] if Mp != M else out


def _sasa_attn_kernel(q_ref, k_ref, v_ref, bias_ref, pool_ref, exp_ref, wp_ref,
                      o_ref, *, kernel_size, stride, new_H, new_W):
    # q_ref:    (1, L, D)            queries at the strided output positions
    # k_ref:    (ks, Hp, new_W, D)   column-shifted padded key planes
    # v_ref:    (ks, Hp, new_W, D)   column-shifted padded value planes
    # bias_ref: (K,)  in SMEM        relative-position bias per window slot
    # pool_ref: (D, H)               0/1 matrix summing channels -> heads
    # exp_ref:  (H, D)               0/1 matrix broadcasting heads -> channels
    # wp_ref:   (D, D)               output projection (fused 1x1 conv)
    # o_ref:    (1, L, D)
    f32 = jnp.float32
    L = new_H * new_W

    q = q_ref[0].astype(f32)                      # (L, D)
    pool = pool_ref[...].astype(f32)              # (D, H)
    expand = exp_ref[...].astype(f32)             # (H, D)

    def slab(ref, i, j):
        # window offset (i, j): rows i, i+stride, ... of the j-shifted plane.
        if stride == 1:
            rows = ref[j, pl.ds(i, new_H), :, :]
        else:
            rows = ref[j, pl.ds(i, new_H, stride), :, :]
        return rows.reshape(L, rows.shape[-1]).astype(f32)     # (L, D)

    # -- logits per window slot, pooled per head (unrolled over K, MXU pooling)
    cols = []
    for i in range(kernel_size):
        for j in range(kernel_size):
            kk = i * kernel_size + j
            prod = q * slab(k_ref, i, j)                                 # (L, D)
            ph = jnp.dot(prod, pool, preferred_element_type=f32)         # (L, H)
            cols.append(ph + bias_ref[kk])

    # -- softmax over the window axis (per head); EUP reciprocal + 1 NR step
    m = cols[0]
    for c in cols[1:]:
        m = jnp.maximum(m, c)
    ps = [jnp.exp(c - m) for c in cols]
    denom = ps[0]
    for p in ps[1:]:
        denom = denom + p
    inv = pl.reciprocal(denom, approx=True)
    inv = inv * (2.0 - denom * inv)               # Newton step -> ~f32 accurate
    # attn_drop with drop_ratio=0.0 is the identity (eval semantics).

    # -- attention-weighted sum over the window (unrolled FMA chain, lane = D)
    acc = jnp.zeros_like(q)                                              # (L, D)
    for i in range(kernel_size):
        for j in range(kernel_size):
            kk = i * kernel_size + j
            wk = jnp.dot(ps[kk], expand, preferred_element_type=f32)     # (L, D)
            acc = acc + wk * slab(v_ref, i, j)
    out = acc * jnp.dot(inv, expand, preferred_element_type=f32)

    # -- fused output projection (1x1 conv) on the MXU
    o_ref[0] = jnp.dot(out, wp_ref[...].astype(f32),
                       preferred_element_type=f32).astype(o_ref.dtype)


# ----------------------------------------------------------------------------
# Wrapper
# ----------------------------------------------------------------------------
def _relative_indices(kernel_size):
    # get_relative_distance: sum of (i, j) window coordinates, row-major.
    i = np.arange(kernel_size)
    return (i[:, None] + i[None, :]).reshape(-1)    # (K,), values in [0, 2ks-2]


def sasa_forward(x_nchw, params, num_heads, kernel_size, padding, stride):
    B, C, H, W = x_nchw.shape
    D = params["w_q"].shape[1]
    hd = D // num_heads
    ks = kernel_size
    new_H = (H - 1) // stride + 1
    new_W = (W - 1) // stride + 1
    L = new_H * new_W
    assert 2 * padding == kernel_size - 1, "unfold output lengths must match"
    # TODO(synk): for shapes where new_W % 8 != 0 the in-kernel (new_H,new_W,D)
    # -> (L, D) flatten is no longer a layout no-op; pad W in that case.

    x = jnp.transpose(x_nchw, (0, 2, 3, 1))          # NHWC
    x2d = x.reshape(B * H * W, C)

    # fused q/k/v 1x1 conv: a single Pallas matmul over concatenated weights
    w_qkv = jnp.concatenate([params["w_q"], params["w_k"], params["w_v"]], axis=1)
    qkv = pointwise_conv(x2d, w_qkv).reshape(B, H, W, 3 * D)
    q, k, v = qkv[..., :D], qkv[..., D:2 * D], qkv[..., 2 * D:]

    # strided query positions (nn.Unfold(kernel_size=1, stride=stride))
    q_s = q[:, ::stride, ::stride, :].reshape(B, L, D)

    # pad k/v once; only ks column-shifted copies (not ks**2). Row shifts and
    # flattening are finished inside the attention kernel.
    pads = ((0, 0), (padding, padding), (padding, padding), (0, 0))
    kp, vp = jnp.pad(k, pads), jnp.pad(v, pads)
    Hp = H + 2 * padding
    span_w = (new_W - 1) * stride + 1
    shift_w = lambda t, j: t[:, :, j:j + span_w:stride, :]   # (B, Hp, new_W, D)
    k_cols = jnp.stack([shift_w(kp, j) for j in range(ks)], axis=1)
    v_cols = jnp.stack([shift_w(vp, j) for j in range(ks)], axis=1)
    k_cols = k_cols.reshape(B * ks, Hp, new_W, D)
    v_cols = v_cols.reshape(B * ks, Hp, new_W, D)

    # relative-position bias (shared across heads) and head pool/expand maps
    bias = params["pos_embedding"][0, _relative_indices(ks)].astype(jnp.float32)
    pool_mat = jnp.asarray(
        np.arange(D)[:, None] // hd == np.arange(num_heads)[None, :], jnp.float32)
    expand_mat = pool_mat.T

    kernel = functools.partial(_sasa_attn_kernel, kernel_size=ks, stride=stride,
                               new_H=new_H, new_W=new_W)
    out = pl.pallas_call(
        kernel,
        out_shape=jax.ShapeDtypeStruct((B, L, D), x.dtype),
        grid=(B,),
        in_specs=[
            pl.BlockSpec((1, L, D), lambda b: (b, 0, 0)),
            pl.BlockSpec((ks, Hp, new_W, D), lambda b: (b, 0, 0, 0)),
            pl.BlockSpec((ks, Hp, new_W, D), lambda b: (b, 0, 0, 0)),
            pl.BlockSpec(memory_space=pltpu.MemorySpace.SMEM),
            pl.BlockSpec((D, num_heads), lambda b: (0, 0)),
            pl.BlockSpec((num_heads, D), lambda b: (0, 0)),
            pl.BlockSpec((D, D), lambda b: (0, 0)),
        ],
        out_specs=pl.BlockSpec((1, L, D), lambda b: (b, 0, 0)),
        compiler_params=pltpu.CompilerParams(dimension_semantics=("parallel",)),
    )(q_s, k_cols, v_cols, bias, pool_mat, expand_mat, params["w_proj"])
    # TODO(synk): for large H*W, add an output-row grid axis with halo DMA
    # (manual make_async_copy) instead of one whole-plane block per batch.

    out = out.reshape(B, new_H, new_W, D)
    return jnp.transpose(out, (0, 3, 1, 2))          # NCHW


# ----------------------------------------------------------------------------
# Pure-JAX reference (mirrors the PyTorch forward) for a correctness check
# ----------------------------------------------------------------------------
def _unfold_windows(t, kernel_size, padding, stride, new_H, new_W):
    B, H, W, C = t.shape
    tp = jnp.pad(t, ((0, 0), (padding, padding), (padding, padding), (0, 0)))
    pats = []
    for i in range(kernel_size):
        for j in range(kernel_size):
            pats.append(
                tp[:, i:i + (new_H - 1) * stride + 1:stride,
                      j:j + (new_W - 1) * stride + 1:stride, :]
            )
    p = jnp.stack(pats, axis=3)
    return p.reshape(B, new_H * new_W, kernel_size * kernel_size, C)


def sasa_reference(x_nchw, params, num_heads, kernel_size, padding, stride):
    B, C, H, W = x_nchw.shape
    out_dim = params["w_q"].shape[1]
    hd = out_dim // num_heads
    K = kernel_size * kernel_size
    new_H = (H - 1) // stride + 1
    new_W = (W - 1) // stride + 1
    L = new_H * new_W

    x = jnp.transpose(x_nchw, (0, 2, 3, 1))
    q = x @ params["w_q"]
    k = x @ params["w_k"]
    v = x @ params["w_v"]

    qs = q[:, ::stride, ::stride, :].reshape(B, L, num_heads, hd)
    kw = _unfold_windows(k, kernel_size, padding, stride, new_H, new_W)
    vw = _unfold_windows(v, kernel_size, padding, stride, new_H, new_W)
    kw = kw.reshape(B, L, K, num_heads, hd)
    vw = vw.reshape(B, L, K, num_heads, hd)

    bias = params["pos_embedding"][0, _relative_indices(kernel_size)]   # (K,)
    logits = jnp.einsum("blhd,blkhd->blhk", qs, kw) + bias
    attn = jax.nn.softmax(logits, axis=-1)
    out = jnp.einsum("blhk,blkhd->blhd", attn, vw)
    out = out.reshape(B, new_H, new_W, out_dim) @ params["w_proj"]
    return jnp.transpose(out, (0, 3, 1, 2))


def init_sasa_params(key, in_dim, out_dim, kernel_size):
    ks = jax.random.split(key, 5)
    return dict(
        w_q=jax.random.normal(ks[0], (in_dim, out_dim), jnp.float32) / np.sqrt(in_dim),
        w_k=jax.random.normal(ks[1], (in_dim, out_dim), jnp.float32) / np.sqrt(in_dim),
        w_v=jax.random.normal(ks[2], (in_dim, out_dim), jnp.float32) / np.sqrt(in_dim),
        w_proj=jax.random.normal(ks[3], (out_dim, out_dim), jnp.float32) / np.sqrt(out_dim),
        pos_embedding=jax.random.normal(ks[4], (1, 2 * kernel_size - 1), jnp.float32),
    )


if __name__ == "__main__":
    B, in_dim, H, W = 2, 4, 16, 16
    out_dim, num_heads = 32, 4
    kernel_size, padding, stride = 3, 1, 1
    # drop_ratio = 0.0 -> nn.Dropout is the identity; replicated as a no-op.

    key = jax.random.PRNGKey(0)
    kx, kparam = jax.random.split(key)
    x = jax.random.normal(kx, (B, in_dim, H, W), jnp.float32)
    params = init_sasa_params(kparam, in_dim, out_dim, kernel_size)

    out = sasa_forward(x, params, num_heads, kernel_size, padding, stride)
    out = jax.block_until_ready(out)

    ref = sasa_reference(x, params, num_heads, kernel_size, padding, stride)
    assert out.shape == (B, out_dim, H, W)
    # Tolerance loosened slightly vs exact-math: softmax denominators use the
    # EUP approximate reciprocal refined by one Newton step.
    assert jnp.allclose(out, ref, atol=1e-3, rtol=1e-3), "mismatch vs reference"
    print("KERNEL_OK")
</pallas_src>

<mosaic_0001>
module attributes {stable_mosaic.version = 11 : i64} {
  func.func @_matmul_kernel(%arg0: i32, %arg1: memref<256x4xf32, #tpu.memory_space<vmem>>, %arg2: memref<4x96xf32, #tpu.memory_space<vmem>>, %arg3: memref<256x96xf32, #tpu.memory_space<vmem>>) attributes {dimension_semantics = [#tpu.dimension_semantics<parallel>], iteration_bounds = array<i64: 2>, scalar_prefetch = 0 : i64, scratch_operands = 0 : i64, tpu.core_type = #tpu.core_type<tc>, window_params = [{transform_indices = @transform_0, window_bounds = array<i64: 256, 4>}, {pipeline_mode = #tpu.pipeline_mode<synchronous>, transform_indices = @transform_1, window_bounds = array<i64: 4, 96>}, {transform_indices = @transform_2, window_bounds = array<i64: 256, 96>}]} {
    %c0 = arith.constant 0 : index
    %c0_0 = arith.constant 0 : index
    %0 = vector.load %arg1[%c0, %c0_0] : memref<256x4xf32, #tpu.memory_space<vmem>>, vector<256x4xf32>
    %c0_1 = arith.constant 0 : index
    %c0_2 = arith.constant 0 : index
    %1 = vector.load %arg2[%c0_1, %c0_2] : memref<4x96xf32, #tpu.memory_space<vmem>>, vector<4x96xf32>
    %cst = arith.constant dense<0.000000e+00> : vector<256x96xf32>
    %2 = tpu.matmul %0, %1, %cst {dimension_numbers = #tpu.dot_dimension_numbers<[1], [0], [0], [1], [0, 0, 1, 1], [], []>} : vector<256x4xf32>, vector<4x96xf32>, vector<256x96xf32> -> vector<256x96xf32>
    %c0_3 = arith.constant 0 : index
    %c0_4 = arith.constant 0 : index
    %3 = vector.load %arg3[%c0_3, %c0_4] : memref<256x96xf32, #tpu.memory_space<vmem>>, vector<256x96xf32>
    tpu.vector_store %arg3[%c0_3, %c0_4], %2 {strides = array<i32>} : memref<256x96xf32, #tpu.memory_space<vmem>>, vector<256x96xf32>,
    return
  }
  func.func @transform_0(%arg0: i32) -> (i32, i32) {
    %c0_i32 = arith.constant 0 : i32
    %c0_i32_0 = arith.constant 0 : i32
    return %arg0, %c0_i32 : i32, i32
  }
  func.func @transform_1(%arg0: i32) -> (i32, i32) {
    %c0_i32 = arith.constant 0 : i32
    %c0_i32_0 = arith.constant 0 : i32
    %c0_i32_1 = arith.constant 0 : i32
    return %c0_i32, %c0_i32_0 : i32, i32
  }
  func.func @transform_2(%arg0: i32) -> (i32, i32) {
    %c0_i32 = arith.constant 0 : i32
    %c0_i32_0 = arith.constant 0 : i32
    return %arg0, %c0_i32 : i32, i32
  }
}

</mosaic_0001>

<bundles_post_ra>
// kernel: tpu_custom_call.1
= control target key start
LH: loop header
LB: loop body
LE: loop exit
PB: predicated region body
PF: predicated region fallthrough
CT: control target
= control target key end

     0   :  { %s755_s9 = smov 0   ;;  %s914_s0 = inlined_call_operand.vmem [shape: f32[512,4], index: 0, kind: input, shape index: {}]   ;;  %s915_s1 = inlined_call_operand.vmem [shape: f32[4,96], index: 1, kind: input, shape index: {}]   ;;  %s916_s2 = inlined_call_operand.vmem [shape: f32[512,96], index: 2, kind: output, shape index: {}]  }
   0x1 LB: > { %s595_s10 = sadd.s32 4294967295, %s738_s9   ;;  %p599_p0 = scmp.ge.s32.totalorder %s738_s9, 1  ;;  %s738_s9 = sphi %s755_s9, %s12_s9  }
   0x2   : > { %p113_p1 = scmp.lt.s32.totalorder %s738_s9, 3 }
   0x4   : > { %p114_p2 = pnand %p599_p0, %p113_p1 }
   0x5   : > { %v179_v0 = vld [vmem:[%s915_s1] sm:$0xf] (!%p114_p2)  ;;  %vm277_vm0 = vcmask (!%p114_p2), 1043456   ;;  %s600_s13 = sshll.u32 (!%p114_p2), %s595_s10, 5  ;;  %vm180_vm1 = vcmask (!%p114_p2), 31744   ;;  %vm506_vm2 = vcmask (!%p114_p2), 785408  }
   0x6   : > { %117 = sbr.rel (%p114_p2) target bundleno = 261 (0x105), region = 28  ;;  %672 = vmatprep.subr.msk.mxu0 (!%p114_p2), %vm277_vm0, %v179_v0  ;;  %722 = vmatprep.subr.msk.mxu1 (!%p114_p2), %vm277_vm0, %v179_v0  ;;  %p136_p3 = scmp.lt.s32.totalorder (!%p114_p2), %s600_s13, 63 }
   0x7   : > { %673 = vmatpush3.msk.msra.mxu0 (!%p114_p2), %vm277_vm0, %v179_v0  ;;  %723 = vmatpush3.msk.msra.mxu1 (!%p114_p2), %vm277_vm0, %v179_v0 }
   0xd   : > { %s918_s13 = smov (!%p136_p3, %s600_s13), 63 }
   0xe   : > { %s601_s14 = sshll.u32 %s918_s13, 3 }
   0xf   : > { %s774_s17 = scalar_lea.vmem %s914_s0, %s601_s14  ;;  %s845_s20 = scalar_lea.vmem %s916_s2, %s601_s14 }
  0x10   : > { %v147_v1 = vld [vmem:[%s774_s17] sm:$0xff]  ;;  %v148_v3 = vld [vmem:[%s774_s17 + $0x8] sm:$0xff]  ;;  %v149_v5 = vld [vmem:[%s774_s17 + $0x10] sm:$0xff] }
  0x11   : > { %v163_v2 = vld [vmem:[%s774_s17 + $0x80] sm:$0xff]  ;;  %674 = vmatprep.mubr.msk.f32.mxu0 %vm180_vm1, %v147_v1  ;;  %v164_v4 = vld [vmem:[%s774_s17 + $0x88] sm:$0xff]  ;;  %v165_v6 = vld [vmem:[%s774_s17 + $0x90] sm:$0xff] }
  0x12   : > { %698 = vmatprep.mubr.msk.f32.mxu1 %vm180_vm1, %v163_v2  ;;  %675 = vmatmul.mubr.msk.f32.vlgmr.msra.gmra.mrb[0].mxu0 %vm180_vm1, %v148_v3  ;;  %v150_v7 = vld [vmem:[%s774_s17 + $0x18] sm:$0xff]  ;;  %v151_v9 = vld [vmem:[%s774_s17 + $0x20] sm:$0xff]  ;;  %v152_v11 = vld [vmem:[%s774_s17 + $0x28] sm:$0xff] }
  0x13   : > { %699 = vmatmul.mubr.msk.f32.vlgmr.msra.gmra.mrb[0].mxu1 %vm180_vm1, %v164_v4  ;;  %677 = vmatprep.mubr.msk.f32.mxu0 %vm180_vm1, %v149_v5  ;;  %v166_v8 = vld [vmem:[%s774_s17 + $0x98] sm:$0xff]  ;;  %v167_v10 = vld [vmem:[%s774_s17 + $0xa0] sm:$0xff]  ;;  %v168_v12 = vld [vmem:[%s774_s17 + $0xa8] sm:$0xff] }
  0x14   : > { %701 = vmatprep.mubr.msk.f32.mxu1 %vm180_vm1, %v165_v6  ;;  %v153_v13 = vld [vmem:[%s774_s17 + $0x30] sm:$0xff]  ;;  %v154_v15 = vld [vmem:[%s774_s17 + $0x38] sm:$0xff]  ;;  %v155_v17 = vld [vmem:[%s774_s17 + $0x40] sm:$0xff] }
  0x15   : > { %v169_v14 = vld [vmem:[%s774_s17 + $0xb0] sm:$0xff]  ;;  %v170_v16 = vld [vmem:[%s774_s17 + $0xb8] sm:$0xff]  ;;  %v171_v18 = vld [vmem:[%s774_s17 + $0xc0] sm:$0xff] }
  0x16   : > { %678 = vmatmul.mubr.msk.f32.gmra.mrb[2].mxu0 %vm180_vm1, %v150_v7  ;;  %v156_v19 = vld [vmem:[%s774_s17 + $0x48] sm:$0xff]  ;;  %v157_v21 = vld [vmem:[%s774_s17 + $0x50] sm:$0xff]  ;;  %v158_v23 = vld [vmem:[%s774_s17 + $0x58] sm:$0xff] }
  0x17   : > { %702 = vmatmul.mubr.msk.f32.gmra.mrb[2].mxu1 %vm180_vm1, %v166_v8  ;;  %680 = vmatprep.mubr.msk.f32.mxu0 %vm180_vm1, %v151_v9  ;;  %v172_v20 = vld [vmem:[%s774_s17 + $0xc8] sm:$0xff]  ;;  %v173_v22 = vld [vmem:[%s774_s17 + $0xd0] sm:$0xff]  ;;  %v174_v24 = vld [vmem:[%s774_s17 + $0xd8] sm:$0xff] }
  0x18   : > { %704 = vmatprep.mubr.msk.f32.mxu1 %vm180_vm1, %v167_v10  ;;  %v159_v25 = vld [vmem:[%s774_s17 + $0x60] sm:$0xff]  ;;  %v160_v27 = vld [vmem:[%s774_s17 + $0x68] sm:$0xff]  ;;  %v161_v29 = vld [vmem:[%s774_s17 + $0x70] sm:$0xff] }
  0x19   : > { %v175_v26 = vld [vmem:[%s774_s17 + $0xe0] sm:$0xff]  ;;  %v176_v28 = vld [vmem:[%s774_s17 + $0xe8] sm:$0xff]  ;;  %v177_v30 = vld [vmem:[%s774_s17 + $0xf0] sm:$0xff] }
  0x1a   : > { %681 = vmatmul.mubr.msk.f32.gmra.mrb[4].mxu0 %vm180_vm1, %v152_v11  ;;  %v162_v31 = vld [vmem:[%s774_s17 + $0x78] sm:$0xff] }
  0x1b   : > { %705 = vmatmul.mubr.msk.f32.gmra.mrb[4].mxu1 %vm180_vm1, %v168_v12  ;;  %683 = vmatprep.mubr.msk.f32.mxu0 %vm180_vm1, %v153_v13  ;;  %v178_v32 = vld [vmem:[%s774_s17 + $0xf8] sm:$0xff] }
  0x1c   : > { %707 = vmatprep.mubr.msk.f32.mxu1 %vm180_vm1, %v169_v14 }
  0x1e   : > { %684 = vmatmul.mubr.msk.f32.gmra.mrb[6].mxu0 %vm180_vm1, %v154_v15 }
  0x1f   : > { %708 = vmatmul.mubr.msk.f32.gmra.mrb[6].mxu1 %vm180_vm1, %v170_v16  ;;  %686 = vmatprep.mubr.msk.f32.mxu0 %vm180_vm1, %v155_v17 }
  0x20   : > { %710 = vmatprep.mubr.msk.f32.mxu1 %vm180_vm1, %v171_v18 }
  0x22   : > { %687 = vmatmul.mubr.msk.f32.gmra.mrb[8].mxu0 %vm180_vm1, %v156_v19 }
  0x23   : > { %711 = vmatmul.mubr.msk.f32.gmra.mrb[8].mxu1 %vm180_vm1, %v172_v20  ;;  %689 = vmatprep.mubr.msk.f32.mxu0 %vm180_vm1, %v157_v21 }
  0x24   : > { %713 = vmatprep.mubr.msk.f32.mxu1 %vm180_vm1, %v173_v22 }
  0x26   : > { %690 = vmatmul.mubr.msk.f32.gmra.mrb[10].mxu0 %vm180_vm1, %v158_v23 }
  0x27   : > { %714 = vmatmul.mubr.msk.f32.gmra.mrb[10].mxu1 %vm180_vm1, %v174_v24  ;;  %692 = vmatprep.mubr.msk.f32.mxu0 %vm180_vm1, %v159_v25 }
  0x28   : > { %716 = vmatprep.mubr.msk.f32.mxu1 %vm180_vm1, %v175_v26 }
  0x2a   : > { %693 = vmatmul.mubr.msk.f32.gmra.mrb[12].mxu0 %vm180_vm1, %v160_v27 }
  0x2b   : > { %717 = vmatmul.mubr.msk.f32.gmra.mrb[12].mxu1 %vm180_vm1, %v176_v28  ;;  %695 = vmatprep.mubr.msk.f32.mxu0 %vm180_vm1, %v161_v29 }
  0x2c   : > { %719 = vmatprep.mubr.msk.f32.mxu1 %vm180_vm1, %v177_v30 }
  0x2e   : > { %696 = vmatmul.mubr.msk.f32.gmra.mrb[14].mxu0 %vm180_vm1, %v162_v31 }
  0x2f   : > { %720 = vmatmul.mubr.msk.f32.gmra.mrb[14].mxu1 %vm180_vm1, %v178_v32 }
  0xe5   : > { %v676_v33 = vpop.f32.mrb[0].mxu0 }
  0xe6   : > { %v700_v34 = vpop.f32.mrb[0].mxu1  ;;  %508 = vst.msk [vmem:[%s845_s20 + $0x8] sm:$0xff] %vm506_vm2, %v676_v33  ;;  %v347_v35 = vpop.f32.mrb[1].mxu0 }
  0xe7   : > { %524 = vst.msk [vmem:[%s845_s20 + $0x88] sm:$0xff] %vm506_vm2, %v700_v34  ;;  %v427_v36 = vpop.f32.mrb[1].mxu1  ;;  %507 = vst.msk [vmem:[%s845_s20] sm:$0xff] %vm506_vm2, %v347_v35 }
  0xe8   : > { %523 = vst.msk [vmem:[%s845_s20 + $0x80] sm:$0xff] %vm506_vm2, %v427_v36 }
  0xe9   : > { %v679_v37 = vpop.f32.mrb[2].mxu0 }
  0xea   : > { %v703_v38 = vpop.f32.mrb[2].mxu1  ;;  %510 = vst.msk [vmem:[%s845_s20 + $0x18] sm:$0xff] %vm506_vm2, %v679_v37  ;;  %v357_v39 = vpop.f32.mrb[3].mxu0 }
  0xeb   : > { %526 = vst.msk [vmem:[%s845_s20 + $0x98] sm:$0xff] %vm506_vm2, %v703_v38  ;;  %v437_v40 = vpop.f32.mrb[3].mxu1  ;;  %509 = vst.msk [vmem:[%s845_s20 + $0x10] sm:$0xff] %vm506_vm2, %v357_v39 }
  0xec   : > { %525 = vst.msk [vmem:[%s845_s20 + $0x90] sm:$0xff] %vm506_vm2, %v437_v40 }
  0xed   : > { %v682_v41 = vpop.f32.mrb[4].mxu0 }
  0xee   : > { %v706_v42 = vpop.f32.mrb[4].mxu1  ;;  %512 = vst.msk [vmem:[%s845_s20 + $0x28] sm:$0xff] %vm506_vm2, %v682_v41  ;;  %v367_v43 = vpop.f32.mrb[5].mxu0 }
  0xef   : > { %528 = vst.msk [vmem:[%s845_s20 + $0xa8] sm:$0xff] %vm506_vm2, %v706_v42  ;;  %v447_v44 = vpop.f32.mrb[5].mxu1  ;;  %511 = vst.msk [vmem:[%s845_s20 + $0x20] sm:$0xff] %vm506_vm2, %v367_v43 }
  0xf0   : > { %527 = vst.msk [vmem:[%s845_s20 + $0xa0] sm:$0xff] %vm506_vm2, %v447_v44 }
  0xf1   : > { %v685_v45 = vpop.f32.mrb[6].mxu0 }
  0xf2   : > { %v709_v46 = vpop.f32.mrb[6].mxu1  ;;  %514 = vst.msk [vmem:[%s845_s20 + $0x38] sm:$0xff] %vm506_vm2, %v685_v45  ;;  %v377_v47 = vpop.f32.mrb[7].mxu0 }
  0xf3   : > { %530 = vst.msk [vmem:[%s845_s20 + $0xb8] sm:$0xff] %vm506_vm2, %v709_v46  ;;  %v457_v48 = vpop.f32.mrb[7].mxu1  ;;  %513 = vst.msk [vmem:[%s845_s20 + $0x30] sm:$0xff] %vm506_vm2, %v377_v47 }
  0xf4   : > { %529 = vst.msk [vmem:[%s845_s20 + $0xb0] sm:$0xff] %vm506_vm2, %v457_v48 }
  0xf5   : > { %v688_v49 = vpop.f32.mrb[8].mxu0 }
  0xf6   : > { %v712_v50 = vpop.f32.mrb[8].mxu1  ;;  %516 = vst.msk [vmem:[%s845_s20 + $0x48] sm:$0xff] %vm506_vm2, %v688_v49  ;;  %v387_v51 = vpop.f32.mrb[9].mxu0 }
  0xf7   : > { %532 = vst.msk [vmem:[%s845_s20 + $0xc8] sm:$0xff] %vm506_vm2, %v712_v50  ;;  %v467_v52 = vpop.f32.mrb[9].mxu1  ;;  %515 = vst.msk [vmem:[%s845_s20 + $0x40] sm:$0xff] %vm506_vm2, %v387_v51 }
  0xf8   : > { %531 = vst.msk [vmem:[%s845_s20 + $0xc0] sm:$0xff] %vm506_vm2, %v467_v52 }
  0xf9   : > { %v691_v53 = vpop.f32.mrb[10].mxu0 }
  0xfa   : > { %v715_v54 = vpop.f32.mrb[10].mxu1  ;;  %518 = vst.msk [vmem:[%s845_s20 + $0x58] sm:$0xff] %vm506_vm2, %v691_v53  ;;  %v397_v55 = vpop.f32.mrb[11].mxu0 }
  0xfb   : > { %534 = vst.msk [vmem:[%s845_s20 + $0xd8] sm:$0xff] %vm506_vm2, %v715_v54  ;;  %v477_v56 = vpop.f32.mrb[11].mxu1  ;;  %517 = vst.msk [vmem:[%s845_s20 + $0x50] sm:$0xff] %vm506_vm2, %v397_v55 }
  0xfc   : > { %533 = vst.msk [vmem:[%s845_s20 + $0xd0] sm:$0xff] %vm506_vm2, %v477_v56 }
  0xfd   : > { %v694_v57 = vpop.f32.mrb[12].mxu0 }
  0xfe   : > { %v718_v58 = vpop.f32.mrb[12].mxu1  ;;  %520 = vst.msk [vmem:[%s845_s20 + $0x68] sm:$0xff] %vm506_vm2, %v694_v57  ;;  %v407_v59 = vpop.f32.mrb[13].mxu0 }
  0xff   : > { %536 = vst.msk [vmem:[%s845_s20 + $0xe8] sm:$0xff] %vm506_vm2, %v718_v58  ;;  %v487_v60 = vpop.f32.mrb[13].mxu1  ;;  %519 = vst.msk [vmem:[%s845_s20 + $0x60] sm:$0xff] %vm506_vm2, %v407_v59 }
 0x100   : > { %535 = vst.msk [vmem:[%s845_s20 + $0xe0] sm:$0xff] %vm506_vm2, %v487_v60 }
 0x101   : > { %v697_v61 = vpop.f32.mrb[14].mxu0 }
 0x102   : > { %v721_v62 = vpop.f32.mrb[14].mxu1  ;;  %522 = vst.msk [vmem:[%s845_s20 + $0x78] sm:$0xff] %vm506_vm2, %v697_v61  ;;  %v417_v63 = vpop.f32.mrb[15].mxu0 }
 0x103   : > { %538 = vst.msk [vmem:[%s845_s20 + $0xf8] sm:$0xff] %vm506_vm2, %v721_v62  ;;  %v497_v0 = vpop.f32.mrb[15].mxu1  ;;  %521 = vst.msk [vmem:[%s845_s20 + $0x70] sm:$0xff] %vm506_vm2, %v417_v63 }
 0x104   : > { %537 = vst.msk [vmem:[%s845_s20 + $0xf0] sm:$0xff] %vm506_vm2, %v497_v0 }
 0x105 PF: > { %s12_s9 = sadd.s32 1, %s738_s9  }
 0x106   : > { %p9_p4 = scmp.ge.s32.totalorder %s12_s9, 4  }
 0x108   :  { %11 = sbr.rel (!%p9_p4) target bundleno = 1 (0x1), region = 58 }

</bundles_post_ra>
